<compile_context>
chip_gen: v5e
topology: v5e:2x2
jax: 0.10.0
libtpu: 0.0.40
codegen_flags: <defaults>
</compile_context>

<pallas_src>
import functools
import math

import jax
import jax.numpy as jnp
from jax.experimental import pallas as pl
from jax.experimental.pallas import tpu as pltpu


def _round_up(v: int, m: int) -> int:
    return ((v + m - 1) // m) * m


def _sigmoid(x):
    # sigmoid(x) == 0.5 * tanh(0.5 * x) + 0.5 ; tanh lowers to the EUP slot and
    # co-issues under MXU pushes (avoids the VALU divide of exp-based sigmoid).
    return 0.5 * jnp.tanh(0.5 * x) + 0.5


def _vmem_capacity_bytes() -> int:
    """Per-TensorCore VMEM capacity, with conservative fallbacks."""
    try:
        return int(pltpu.get_tpu_info().vmem_capacity_bytes)
    except Exception:
        try:
            kind = jax.devices()[0].device_kind.lower()
        except Exception:
            kind = ""
        return (64 << 20) if "7" in kind else (128 << 20)


# ----------------------------------------------------------------------------
# Kernels
# ----------------------------------------------------------------------------
def _mlp_resident_kernel(*refs, hidden_layers: int):
    """All weights VMEM-resident; one batch tile per grid step."""
    if hidden_layers > 0:
        (x_ref, w_in_ref, b_in_ref, w_hid_ref, b_hid_ref,
         w_out_ref, b_out_ref, out_ref) = refs
    else:
        (x_ref, w_in_ref, b_in_ref, w_out_ref, b_out_ref, out_ref) = refs
        w_hid_ref = b_hid_ref = None

    # Input layer: bf16 MXU matmul, f32 accumulation, f32 epilogue.
    h = jnp.dot(x_ref[...], w_in_ref[...], preferred_element_type=jnp.float32)
    h = _sigmoid(h + b_in_ref[...])

    # Hidden layers (compile-time count -> static unroll; deep nets use the
    # streaming kernel instead).
    for l in range(hidden_layers):
        h = jnp.dot(h.astype(jnp.bfloat16), w_hid_ref[l],
                    preferred_element_type=jnp.float32)
        h = _sigmoid(h + b_hid_ref[l])

    # Output layer: no sigmoid (the PyTorch module drops the trailing Sigmoid).
    o = jnp.dot(h.astype(jnp.bfloat16), w_out_ref[...],
                preferred_element_type=jnp.float32)
    out_ref[...] = (o + b_out_ref[...]).astype(out_ref.dtype)


def _mlp_streaming_kernel(x_ref, w_in_ref, b_in_ref, w_hid_ref, b_hid_ref,
                          w_out_ref, b_out_ref, out_ref, h_ref):
    """Layer-streaming variant: grid = (batch_tiles, hidden_layers).

    w_hid/b_hid stream one layer per step (double-buffered by Pallas); the
    activation lives in a VMEM scratch accumulator across the layer axis.
    """
    l = pl.program_id(1)

    @pl.when(l == 0)
    def _():
        h0 = jnp.dot(x_ref[...], w_in_ref[...],
                     preferred_element_type=jnp.float32)
        h_ref[...] = _sigmoid(h0 + b_in_ref[...])

    h = jnp.dot(h_ref[...].astype(jnp.bfloat16), w_hid_ref[0],
                preferred_element_type=jnp.float32)
    h_ref[...] = _sigmoid(h + b_hid_ref[0])

    @pl.when(l == pl.num_programs(1) - 1)
    def _():
        o = jnp.dot(h_ref[...].astype(jnp.bfloat16), w_out_ref[...],
                    preferred_element_type=jnp.float32)
        out_ref[...] = (o + b_out_ref[...]).astype(out_ref.dtype)


# ----------------------------------------------------------------------------
# Parameter init / preparation
# ----------------------------------------------------------------------------
def init_network_params(key, feature_size, dimension_size, neurons, hidden_layers):
    """Deterministic init mimicking torch.nn.Linear default U[-1/sqrt(fan_in), +]."""
    n_linear = hidden_layers + 2
    keys = jax.random.split(key, 2 * n_linear)

    def lin(kw, kb, fan_in, fan_out):
        bound = 1.0 / math.sqrt(fan_in)
        w = jax.random.uniform(kw, (fan_in, fan_out), jnp.float32, -bound, bound)
        b = jax.random.uniform(kb, (1, fan_out), jnp.float32, -bound, bound)
        return w, b

    w_in, b_in = lin(keys[0], keys[1], feature_size, neurons)

    w_hid_list, b_hid_list = [], []
    for i in range(hidden_layers):
        w, b = lin(keys[2 + 2 * i], keys[3 + 2 * i], neurons, neurons)
        w_hid_list.append(w)
        b_hid_list.append(b)
    if hidden_layers > 0:
        w_hid = jnp.stack(w_hid_list, axis=0)          # (L, N, N)
        b_hid = jnp.stack(b_hid_list, axis=0)          # (L, 1, N)
    else:
        w_hid = jnp.zeros((0, neurons, neurons), jnp.float32)
        b_hid = jnp.zeros((0, 1, neurons), jnp.float32)

    w_out, b_out = lin(keys[-2], keys[-1], neurons, dimension_size)
    return w_in, b_in, w_hid, b_hid, w_out, b_out


def prepare_params(params, *, weight_dtype=jnp.bfloat16):
    """Pad + cast weights ONCE (hoisted out of the per-call wrapper).

    Padding to lane-dense multiples of 128 is numerically benign: padded
    neuron columns produce sigmoid(0)=0.5 but feed zero weight rows in the
    next layer, so real outputs are unaffected.
    NOTE: on v6e/v7x the MXU is 256-wide; for neurons in (128, 256] the
    128-rounding already yields a full 256 tile; tiny nets are deliberately
    NOT padded further (they are DMA/overhead-bound, not MXU-bound).
    """
    w_in, b_in, w_hid, b_hid, w_out, b_out = params
    feature_size, neurons = w_in.shape
    dim_out = w_out.shape[1]
    hidden_layers = int(w_hid.shape[0])

    f_pad = _round_up(feature_size, 128)
    n_pad = _round_up(neurons, 128)
    d_pad = _round_up(dim_out, 128)

    def pad2(a, rows, cols, dt):
        out = jnp.zeros((rows, cols), dt)
        return out.at[:a.shape[0], :a.shape[1]].set(a.astype(dt))

    prepared = dict(
        feature_size=feature_size, neurons=neurons, dim_out=dim_out,
        hidden_layers=hidden_layers,
        f_pad=f_pad, n_pad=n_pad, d_pad=d_pad,
        x_dtype=weight_dtype,
        w_in=pad2(w_in, f_pad, n_pad, weight_dtype),
        b_in=pad2(b_in, 1, n_pad, jnp.float32),
        w_out=pad2(w_out, n_pad, d_pad, weight_dtype),
        b_out=pad2(b_out, 1, d_pad, jnp.float32),
    )
    if hidden_layers > 0:
        w_hid_p = jnp.zeros((hidden_layers, n_pad, n_pad), weight_dtype)
        w_hid_p = w_hid_p.at[:, :neurons, :neurons].set(w_hid.astype(weight_dtype))
        b_hid_p = jnp.zeros((hidden_layers, 1, n_pad), jnp.float32)
        b_hid_p = b_hid_p.at[:, :, :neurons].set(b_hid.astype(jnp.float32))
        prepared["w_hid"] = w_hid_p
        prepared["b_hid"] = b_hid_p
    else:
        prepared["w_hid"] = None
        prepared["b_hid"] = None
    return prepared


# ----------------------------------------------------------------------------
# Forward wrapper
# ----------------------------------------------------------------------------
def network_forward_pallas(x, prepared, *, batch_tile=512,
                           out_dtype=jnp.float32, force_streaming=False):
    batch, feature_size = x.shape
    assert feature_size == prepared["feature_size"]
    L = prepared["hidden_layers"]
    f_pad, n_pad, d_pad = prepared["f_pad"], prepared["n_pad"], prepared["d_pad"]
    dim_out = prepared["dim_out"]
    w_dtype = prepared["x_dtype"]
    w_isize = jnp.dtype(w_dtype).itemsize
    o_isize = jnp.dtype(out_dtype).itemsize

    # Batch tile: 16-aligned (bf16 min sublane tile); for batch <= batch_tile
    # split into ~2 tiles so the "parallel" axis can shard across both v7x TCs.
    batch_tile = max(16, _round_up(batch_tile, 16))
    if batch <= batch_tile:
        tb = max(16, _round_up(-(-batch // 2), 16))
    else:
        tb = batch_tile
    b_pad = _round_up(batch, tb)
    n_btiles = b_pad // tb

    # Per-call work: only pad x (weights were prepared once).
    x_p = jnp.zeros((b_pad, f_pad), w_dtype)
    x_p = x_p.at[:batch, :feature_size].set(x.astype(w_dtype))

    # --- VMEM budget (per TensorCore) and resident-vs-streaming decision -----
    weight_bytes = ((prepared["w_in"].size + prepared["w_out"].size) * w_isize
                    + (prepared["b_in"].size + prepared["b_out"].size) * 4)
    hid_bytes = 0
    if L > 0:
        hid_bytes = prepared["w_hid"].size * w_isize + prepared["b_hid"].size * 4
    act_bytes = 2 * (tb * f_pad * w_isize + tb * d_pad * o_isize) + tb * n_pad * 4
    resident_bytes = weight_bytes + hid_bytes + act_bytes

    vmem_cap = _vmem_capacity_bytes()
    resident_budget = (45 * vmem_cap) // 100     # ~28 MiB on v7x, ~57 MiB on v5e/v6e
    vmem_limit_cap = (75 * vmem_cap) // 100      # ~48 MiB on v7x

    use_streaming = (L >= 1) and (force_streaming
                                  or resident_bytes > resident_budget
                                  or L > 32)     # also bound kernel unroll size

    flops = 2 * b_pad * (f_pad * n_pad + L * n_pad * n_pad + n_pad * d_pad)
    cost = pl.CostEstimate(
        flops=flops,
        transcendentals=b_pad * n_pad * (L + 1),
        bytes_accessed=(x_p.size * w_isize + b_pad * d_pad * o_isize
                        + weight_bytes + hid_bytes))

    # --- Pallas call builders -------------------------------------------------
    def _const_spec(shape, grid_ndim, single_buffer):
        zeros = (0,) * len(shape)
        idx = (lambda i: zeros) if grid_ndim == 1 else (lambda b, l: zeros)
        if single_buffer:
            # Never-revisited blocks: a single VMEM buffer is enough.
            return pl.BlockSpec(shape, idx, pipeline_mode=pl.Buffered(1))
        return pl.BlockSpec(shape, idx)

    def run_resident(single_buffer):
        in_specs = [pl.BlockSpec((tb, f_pad), lambda i: (i, 0)),
                    _const_spec((f_pad, n_pad), 1, single_buffer),
                    _const_spec((1, n_pad), 1, single_buffer)]
        args = [x_p, prepared["w_in"], prepared["b_in"]]
        if L > 0:
            in_specs += [_const_spec((L, n_pad, n_pad), 1, single_buffer),
                         _const_spec((L, 1, n_pad), 1, single_buffer)]
            args += [prepared["w_hid"], prepared["b_hid"]]
        in_specs += [_const_spec((n_pad, d_pad), 1, single_buffer),
                     _const_spec((1, d_pad), 1, single_buffer)]
        args += [prepared["w_out"], prepared["b_out"]]

        vmem_limit = min(max(2 * resident_bytes + (8 << 20), 32 << 20),
                         vmem_limit_cap)
        return pl.pallas_call(
            functools.partial(_mlp_resident_kernel, hidden_layers=L),
            out_shape=jax.ShapeDtypeStruct((b_pad, d_pad), out_dtype),
            grid=(n_btiles,),
            in_specs=in_specs,
            out_specs=pl.BlockSpec((tb, d_pad), lambda i: (i, 0)),
            compiler_params=pltpu.CompilerParams(
                dimension_semantics=("parallel",),
                vmem_limit_bytes=int(vmem_limit)),
            cost_estimate=cost,
        )(*args)

    def run_streaming(single_buffer):
        in_specs = [
            pl.BlockSpec((tb, f_pad), lambda b, l: (b, 0)),            # x (per batch tile)
            _const_spec((f_pad, n_pad), 2, single_buffer),             # w_in (resident)
            _const_spec((1, n_pad), 2, single_buffer),                 # b_in
            pl.BlockSpec((1, n_pad, n_pad), lambda b, l: (l, 0, 0)),   # w_hid (streamed)
            pl.BlockSpec((1, 1, n_pad), lambda b, l: (l, 0, 0)),       # b_hid (streamed)
            _const_spec((n_pad, d_pad), 2, single_buffer),             # w_out (resident)
            _const_spec((1, d_pad), 2, single_buffer),                 # b_out
        ]
        stream_bytes = (weight_bytes + 2 * (n_pad * n_pad * w_isize + n_pad * 4)
                        + act_bytes + tb * n_pad * 4)
        vmem_limit = min(max(2 * stream_bytes + (8 << 20), 32 << 20),
                         vmem_limit_cap)
        return pl.pallas_call(
            _mlp_streaming_kernel,
            out_shape=jax.ShapeDtypeStruct((b_pad, d_pad), out_dtype),
            grid=(n_btiles, L),
            in_specs=in_specs,
            out_specs=pl.BlockSpec((tb, d_pad), lambda b, l: (b, 0)),
            scratch_shapes=[pltpu.VMEM((tb, n_pad), jnp.float32)],
            compiler_params=pltpu.CompilerParams(
                dimension_semantics=("parallel", "arbitrary"),
                vmem_limit_bytes=int(vmem_limit)),
            cost_estimate=cost,
        )(x_p, prepared["w_in"], prepared["b_in"], prepared["w_hid"],
          prepared["b_hid"], prepared["w_out"], prepared["b_out"])

    run = run_streaming if use_streaming else run_resident
    try:
        out_p = run(True)
    except Exception:
        # Some Pallas versions reject pipeline_mode on pallas_call BlockSpecs;
        # fall back to default double-buffered weight blocks (correct, just
        # slightly more VMEM).
        out_p = run(False)

    return out_p[:batch, :dim_out]


def network_forward_ref(x, params, hidden_layers):
    """Pure-JAX reference with the same bf16-operand / f32-accumulate precision."""
    w_in, b_in, w_hid, b_hid, w_out, b_out = params
    bf16 = jnp.bfloat16
    h = jax.nn.sigmoid(
        jnp.dot(x.astype(bf16), w_in.astype(bf16),
                preferred_element_type=jnp.float32) + b_in)
    for l in range(hidden_layers):
        h = jax.nn.sigmoid(
            jnp.dot(h.astype(bf16), w_hid[l].astype(bf16),
                    preferred_element_type=jnp.float32) + b_hid[l])
    return jnp.dot(h.astype(bf16), w_out.astype(bf16),
                   preferred_element_type=jnp.float32) + b_out


if __name__ == "__main__":
    # Small shapes consistent with the module's forward
    batch = 8
    feature_size = 6
    dimension_size = 4
    neurons = 32
    hidden_layers = 2

    key = jax.random.PRNGKey(0)
    k_params, k_x = jax.random.split(key)

    params = init_network_params(k_params, feature_size, dimension_size,
                                 neurons, hidden_layers)
    prepared = prepare_params(params)                 # pad/cast weights ONCE
    x = jax.random.normal(k_x, (batch, feature_size), jnp.float32)

    # Main (resident) path
    out = jax.block_until_ready(network_forward_pallas(x, prepared))
    ref = network_forward_ref(x, params, hidden_layers)
    assert out.shape == (batch, dimension_size)
    assert jnp.allclose(out, ref, atol=2e-3, rtol=2e-3), "mismatch (resident path)"

    # Layer-streaming fallback path (forced, same tiny shapes)
    out_s = jax.block_until_ready(
        network_forward_pallas(x, prepared, force_streaming=True))
    assert jnp.allclose(out_s, ref, atol=2e-3, rtol=2e-3), "mismatch (streaming path)"

    # hidden_layers == 0 path (no dummy hidden-weight stack is DMAed)
    params0 = init_network_params(k_params, feature_size, dimension_size, neurons, 0)
    prepared0 = prepare_params(params0)
    out0 = jax.block_until_ready(network_forward_pallas(x, prepared0))
    ref0 = network_forward_ref(x, params0, 0)
    assert jnp.allclose(out0, ref0, atol=2e-3, rtol=2e-3), "mismatch (L=0 path)"

    print("KERNEL_OK")
</pallas_src>

<mosaic_0001>
module attributes {stable_mosaic.version = 11 : i64} {
  func.func @_mlp_resident_kernel(%arg0: i32, %arg1: memref<16x128xbf16, #tpu.memory_space<vmem>>, %arg2: memref<128x128xbf16, #tpu.memory_space<vmem>>, %arg3: memref<1x128xf32, #tpu.memory_space<vmem>>, %arg4: memref<2x128x128xbf16, #tpu.memory_space<vmem>>, %arg5: memref<2x1x128xf32, #tpu.memory_space<vmem>>, %arg6: memref<128x128xbf16, #tpu.memory_space<vmem>>, %arg7: memref<1x128xf32, #tpu.memory_space<vmem>>, %arg8: memref<16x128xf32, #tpu.memory_space<vmem>>) attributes {dimension_semantics = [#tpu.dimension_semantics<parallel>], iteration_bounds = array<i64: 1>, scalar_prefetch = 0 : i64, scratch_operands = 0 : i64, tpu.core_type = #tpu.core_type<tc>, window_params = [{transform_indices = @transform_0, window_bounds = array<i64: 16, 128>}, {pipeline_mode = #tpu.pipeline_mode<synchronous>, transform_indices = @transform_1, window_bounds = array<i64: 128, 128>}, {pipeline_mode = #tpu.pipeline_mode<synchronous>, transform_indices = @transform_2, window_bounds = array<i64: 1, 128>}, {pipeline_mode = #tpu.pipeline_mode<synchronous>, transform_indices = @transform_3, window_bounds = array<i64: 2, 128, 128>}, {pipeline_mode = #tpu.pipeline_mode<synchronous>, transform_indices = @transform_4, window_bounds = array<i64: 2, 1, 128>}, {pipeline_mode = #tpu.pipeline_mode<synchronous>, transform_indices = @transform_5, window_bounds = array<i64: 128, 128>}, {pipeline_mode = #tpu.pipeline_mode<synchronous>, transform_indices = @transform_6, window_bounds = array<i64: 1, 128>}, {transform_indices = @transform_7, window_bounds = array<i64: 16, 128>}]} {
    %c0 = arith.constant 0 : index
    %c0_0 = arith.constant 0 : index
    %0 = vector.load %arg1[%c0, %c0_0] : memref<16x128xbf16, #tpu.memory_space<vmem>>, vector<16x128xbf16>
    %c0_1 = arith.constant 0 : index
    %c0_2 = arith.constant 0 : index
    %1 = vector.load %arg2[%c0_1, %c0_2] : memref<128x128xbf16, #tpu.memory_space<vmem>>, vector<128x128xbf16>
    %cst = arith.constant dense<0.000000e+00> : vector<16x128xf32>
    %2 = tpu.matmul %0, %1, %cst {dimension_numbers = #tpu.dot_dimension_numbers<[1], [0], [0], [1], [0, 0, 1, 1], [], []>} : vector<16x128xbf16>, vector<128x128xbf16>, vector<16x128xf32> -> vector<16x128xf32>
    %c0_3 = arith.constant 0 : index
    %c0_4 = arith.constant 0 : index
    %3 = vector.load %arg3[%c0_3, %c0_4] : memref<1x128xf32, #tpu.memory_space<vmem>>, vector<1x128xf32>
    %4 = vector.broadcast %3 : vector<1x128xf32> to vector<16x128xf32>
    %5 = arith.addf %2, %4 : vector<16x128xf32>
    %cst_5 = arith.constant 5.000000e-01 : f32
    %6 = vector.broadcast %cst_5 : f32 to vector<16x128xf32>
    %7 = arith.mulf %6, %5 : vector<16x128xf32>
    %8 = math.tanh %7 : vector<16x128xf32>
    %cst_6 = arith.constant 5.000000e-01 : f32
    %9 = vector.broadcast %cst_6 : f32 to vector<16x128xf32>
    %10 = arith.mulf %9, %8 : vector<16x128xf32>
    %cst_7 = arith.constant 5.000000e-01 : f32
    %11 = vector.broadcast %cst_7 : f32 to vector<16x128xf32>
    %12 = arith.addf %10, %11 : vector<16x128xf32>
    %13 = arith.truncf %12 : vector<16x128xf32> to vector<16x128xbf16>
    %c0_8 = arith.constant 0 : index
    %c0_9 = arith.constant 0 : index
    %c0_10 = arith.constant 0 : index
    %14 = vector.load %arg4[%c0_8, %c0_9, %c0_10] : memref<2x128x128xbf16, #tpu.memory_space<vmem>>, vector<1x128x128xbf16>
    %15 = vector.shape_cast %14 : vector<1x128x128xbf16> to vector<128x128xbf16>
    %cst_11 = arith.constant dense<0.000000e+00> : vector<16x128xf32>
    %16 = tpu.matmul %13, %15, %cst_11 {dimension_numbers = #tpu.dot_dimension_numbers<[1], [0], [0], [1], [0, 0, 1, 1], [], []>} : vector<16x128xbf16>, vector<128x128xbf16>, vector<16x128xf32> -> vector<16x128xf32>
    %c0_12 = arith.constant 0 : index
    %c0_13 = arith.constant 0 : index
    %c0_14 = arith.constant 0 : index
    %17 = vector.load %arg5[%c0_12, %c0_13, %c0_14] : memref<2x1x128xf32, #tpu.memory_space<vmem>>, vector<1x1x128xf32>
    %18 = vector.shape_cast %17 : vector<1x1x128xf32> to vector<1x128xf32>
    %19 = vector.broadcast %18 : vector<1x128xf32> to vector<16x128xf32>
    %20 = arith.addf %16, %19 : vector<16x128xf32>
    %cst_15 = arith.constant 5.000000e-01 : f32
    %21 = vector.broadcast %cst_15 : f32 to vector<16x128xf32>
    %22 = arith.mulf %21, %20 : vector<16x128xf32>
    %23 = math.tanh %22 : vector<16x128xf32>
    %cst_16 = arith.constant 5.000000e-01 : f32
    %24 = vector.broadcast %cst_16 : f32 to vector<16x128xf32>
    %25 = arith.mulf %24, %23 : vector<16x128xf32>
    %cst_17 = arith.constant 5.000000e-01 : f32
    %26 = vector.broadcast %cst_17 : f32 to vector<16x128xf32>
    %27 = arith.addf %25, %26 : vector<16x128xf32>
    %28 = arith.truncf %27 : vector<16x128xf32> to vector<16x128xbf16>
    %c1 = arith.constant 1 : index
    %c0_18 = arith.constant 0 : index
    %c0_19 = arith.constant 0 : index
    %29 = vector.load %arg4[%c1, %c0_18, %c0_19] : memref<2x128x128xbf16, #tpu.memory_space<vmem>>, vector<1x128x128xbf16>
    %30 = vector.shape_cast %29 : vector<1x128x128xbf16> to vector<128x128xbf16>
    %cst_20 = arith.constant dense<0.000000e+00> : vector<16x128xf32>
    %31 = tpu.matmul %28, %30, %cst_20 {dimension_numbers = #tpu.dot_dimension_numbers<[1], [0], [0], [1], [0, 0, 1, 1], [], []>} : vector<16x128xbf16>, vector<128x128xbf16>, vector<16x128xf32> -> vector<16x128xf32>
    %c1_21 = arith.constant 1 : index
    %c0_22 = arith.constant 0 : index
    %c0_23 = arith.constant 0 : index
    %32 = vector.load %arg5[%c1_21, %c0_22, %c0_23] : memref<2x1x128xf32, #tpu.memory_space<vmem>>, vector<1x1x128xf32>
    %33 = vector.shape_cast %32 : vector<1x1x128xf32> to vector<1x128xf32>
    %34 = vector.broadcast %33 : vector<1x128xf32> to vector<16x128xf32>
    %35 = arith.addf %31, %34 : vector<16x128xf32>
    %cst_24 = arith.constant 5.000000e-01 : f32
    %36 = vector.broadcast %cst_24 : f32 to vector<16x128xf32>
    %37 = arith.mulf %36, %35 : vector<16x128xf32>
    %38 = math.tanh %37 : vector<16x128xf32>
    %cst_25 = arith.constant 5.000000e-01 : f32
    %39 = vector.broadcast %cst_25 : f32 to vector<16x128xf32>
    %40 = arith.mulf %39, %38 : vector<16x128xf32>
    %cst_26 = arith.constant 5.000000e-01 : f32
    %41 = vector.broadcast %cst_26 : f32 to vector<16x128xf32>
    %42 = arith.addf %40, %41 : vector<16x128xf32>
    %43 = arith.truncf %42 : vector<16x128xf32> to vector<16x128xbf16>
    %c0_27 = arith.constant 0 : index
    %c0_28 = arith.constant 0 : index
    %44 = vector.load %arg6[%c0_27, %c0_28] : memref<128x128xbf16, #tpu.memory_space<vmem>>, vector<128x128xbf16>
    %cst_29 = arith.constant dense<0.000000e+00> : vector<16x128xf32>
    %45 = tpu.matmul %43, %44, %cst_29 {dimension_numbers = #tpu.dot_dimension_numbers<[1], [0], [0], [1], [0, 0, 1, 1], [], []>} : vector<16x128xbf16>, vector<128x128xbf16>, vector<16x128xf32> -> vector<16x128xf32>
    %c0_30 = arith.constant 0 : index
    %c0_31 = arith.constant 0 : index
    %46 = vector.load %arg7[%c0_30, %c0_31] : memref<1x128xf32, #tpu.memory_space<vmem>>, vector<1x128xf32>
    %47 = vector.broadcast %46 : vector<1x128xf32> to vector<16x128xf32>
    %48 = arith.addf %45, %47 : vector<16x128xf32>
    %c0_32 = arith.constant 0 : index
    %c0_33 = arith.constant 0 : index
    %49 = vector.load %arg8[%c0_32, %c0_33] : memref<16x128xf32, #tpu.memory_space<vmem>>, vector<16x128xf32>
    tpu.vector_store %arg8[%c0_32, %c0_33], %48 {strides = array<i32>} : memref<16x128xf32, #tpu.memory_space<vmem>>, vector<16x128xf32>,
    return
  }
  func.func @transform_0(%arg0: i32) -> (i32, i32) {
    %c0_i32 = arith.constant 0 : i32
    %c0_i32_0 = arith.constant 0 : i32
    return %arg0, %c0_i32 : i32, i32
  }
  func.func @transform_1(%arg0: i32) -> (i32, i32) {
    %c0_i32 = arith.constant 0 : i32
    %c0_i32_0 = arith.constant 0 : i32
    %c0_i32_1 = arith.constant 0 : i32
    return %c0_i32, %c0_i32_0 : i32, i32
  }
  func.func @transform_2(%arg0: i32) -> (i32, i32) {
    %c0_i32 = arith.constant 0 : i32
    %c0_i32_0 = arith.constant 0 : i32
    %c0_i32_1 = arith.constant 0 : i32
    return %c0_i32, %c0_i32_0 : i32, i32
  }
  func.func @transform_3(%arg0: i32) -> (i32, i32, i32) {
    %c0_i32 = arith.constant 0 : i32
    %c0_i32_0 = arith.constant 0 : i32
    %c0_i32_1 = arith.constant 0 : i32
    %c0_i32_2 = arith.constant 0 : i32
    return %c0_i32, %c0_i32_0, %c0_i32_1 : i32, i32, i32
  }
  func.func @transform_4(%arg0: i32) -> (i32, i32, i32) {
    %c0_i32 = arith.constant 0 : i32
    %c0_i32_0 = arith.constant 0 : i32
    %c0_i32_1 = arith.constant 0 : i32
    %c0_i32_2 = arith.constant 0 : i32
    return %c0_i32, %c0_i32_0, %c0_i32_1 : i32, i32, i32
  }
  func.func @transform_5(%arg0: i32) -> (i32, i32) {
    %c0_i32 = arith.constant 0 : i32
    %c0_i32_0 = arith.constant 0 : i32
    %c0_i32_1 = arith.constant 0 : i32
    return %c0_i32, %c0_i32_0 : i32, i32
  }
  func.func @transform_6(%arg0: i32) -> (i32, i32) {
    %c0_i32 = arith.constant 0 : i32
    %c0_i32_0 = arith.constant 0 : i32
    %c0_i32_1 = arith.constant 0 : i32
    return %c0_i32, %c0_i32_0 : i32, i32
  }
  func.func @transform_7(%arg0: i32) -> (i32, i32) {
    %c0_i32 = arith.constant 0 : i32
    %c0_i32_0 = arith.constant 0 : i32
    return %arg0, %c0_i32 : i32, i32
  }
}

module attributes {stable_mosaic.version = 11 : i64} {
  func.func @_mlp_resident_kernel(%arg0: i32, %arg1: memref<16x128xbf16, #tpu.memory_space<vmem>>, %arg2: memref<128x128xbf16, #tpu.memory_space<vmem>>, %arg3: memref<1x128xf32, #tpu.memory_space<vmem>>, %arg4: memref<2x128x128xbf16, #tpu.memory_space<vmem>>, %arg5: memref<2x1x128xf32, #tpu.memory_space<vmem>>, %arg6: memref<128x128xbf16, #tpu.memory_space<vmem>>, %arg7: memref<1x128xf32, #tpu.memory_space<vmem>>, %arg8: memref<16x128xf32, #tpu.memory_space<vmem>>) attributes {dimension_semantics = [#tpu.dimension_semantics<parallel>], iteration_bounds = array<i64: 1>, scalar_prefetch = 0 : i64, scratch_operands = 0 : i64, tpu.core_type = #tpu.core_type<tc>, window_params = [{transform_indices = @transform_0, window_bounds = array<i64: 16, 128>}, {pipeline_mode = #tpu.pipeline_mode<synchronous>, transform_indices = @transform_1, window_bounds = array<i64: 128, 128>}, {pipeline_mode = #tpu.pipeline_mode<synchronous>, transform_indices = @transform_2, window_bounds = array<i64: 1, 128>}, {pipeline_mode = #tpu.pipeline_mode<synchronous>, transform_indices = @transform_3, window_bounds = array<i64: 2, 128, 128>}, {pipeline_mode = #tpu.pipeline_mode<synchronous>, transform_indices = @transform_4, window_bounds = array<i64: 2, 1, 128>}, {pipeline_mode = #tpu.pipeline_mode<synchronous>, transform_indices = @transform_5, window_bounds = array<i64: 128, 128>}, {pipeline_mode = #tpu.pipeline_mode<synchronous>, transform_indices = @transform_6, window_bounds = array<i64: 1, 128>}, {transform_indices = @transform_7, window_bounds = array<i64: 16, 128>}]} {
    %c0 = arith.constant 0 : index
    %c0_0 = arith.constant 0 : index
    %0 = vector.load %arg1[%c0, %c0_0] : memref<16x128xbf16, #tpu.memory_space<vmem>>, vector<16x128xbf16>
    %c0_1 = arith.constant 0 : index
    %c0_2 = arith.constant 0 : index
    %1 = vector.load %arg2[%c0_1, %c0_2] : memref<128x128xbf16, #tpu.memory_space<vmem>>, vector<128x128xbf16>
    %cst = arith.constant dense<0.000000e+00> : vector<16x128xf32>
    %2 = tpu.matmul %0, %1, %cst {dimension_numbers = #tpu.dot_dimension_numbers<[1], [0], [0], [1], [0, 0, 1, 1], [], []>} : vector<16x128xbf16>, vector<128x128xbf16>, vector<16x128xf32> -> vector<16x128xf32>
    %c0_3 = arith.constant 0 : index
    %c0_4 = arith.constant 0 : index
    %3 = vector.load %arg3[%c0_3, %c0_4] : memref<1x128xf32, #tpu.memory_space<vmem>>, vector<1x128xf32>
    %4 = vector.broadcast %3 : vector<1x128xf32> to vector<16x128xf32>
    %5 = arith.addf %2, %4 : vector<16x128xf32>
    %cst_5 = arith.constant 5.000000e-01 : f32
    %6 = vector.broadcast %cst_5 : f32 to vector<16x128xf32>
    %7 = arith.mulf %6, %5 : vector<16x128xf32>
    %8 = math.tanh %7 : vector<16x128xf32>
    %cst_6 = arith.constant 5.000000e-01 : f32
    %9 = vector.broadcast %cst_6 : f32 to vector<16x128xf32>
    %10 = arith.mulf %9, %8 : vector<16x128xf32>
    %cst_7 = arith.constant 5.000000e-01 : f32
    %11 = vector.broadcast %cst_7 : f32 to vector<16x128xf32>
    %12 = arith.addf %10, %11 : vector<16x128xf32>
    %13 = arith.truncf %12 : vector<16x128xf32> to vector<16x128xbf16>
    %c0_8 = arith.constant 0 : index
    %c0_9 = arith.constant 0 : index
    %c0_10 = arith.constant 0 : index
    %14 = vector.load %arg4[%c0_8, %c0_9, %c0_10] : memref<2x128x128xbf16, #tpu.memory_space<vmem>>, vector<1x128x128xbf16>
    %15 = vector.shape_cast %14 : vector<1x128x128xbf16> to vector<128x128xbf16>
    %cst_11 = arith.constant dense<0.000000e+00> : vector<16x128xf32>
    %16 = tpu.matmul %13, %15, %cst_11 {dimension_numbers = #tpu.dot_dimension_numbers<[1], [0], [0], [1], [0, 0, 1, 1], [], []>} : vector<16x128xbf16>, vector<128x128xbf16>, vector<16x128xf32> -> vector<16x128xf32>
    %c0_12 = arith.constant 0 : index
    %c0_13 = arith.constant 0 : index
    %c0_14 = arith.constant 0 : index
    %17 = vector.load %arg5[%c0_12, %c0_13, %c0_14] : memref<2x1x128xf32, #tpu.memory_space<vmem>>, vector<1x1x128xf32>
    %18 = vector.shape_cast %17 : vector<1x1x128xf32> to vector<1x128xf32>
    %19 = vector.broadcast %18 : vector<1x128xf32> to vector<16x128xf32>
    %20 = arith.addf %16, %19 : vector<16x128xf32>
    %cst_15 = arith.constant 5.000000e-01 : f32
    %21 = vector.broadcast %cst_15 : f32 to vector<16x128xf32>
    %22 = arith.mulf %21, %20 : vector<16x128xf32>
    %23 = math.tanh %22 : vector<16x128xf32>
    %cst_16 = arith.constant 5.000000e-01 : f32
    %24 = vector.broadcast %cst_16 : f32 to vector<16x128xf32>
    %25 = arith.mulf %24, %23 : vector<16x128xf32>
    %cst_17 = arith.constant 5.000000e-01 : f32
    %26 = vector.broadcast %cst_17 : f32 to vector<16x128xf32>
    %27 = arith.addf %25, %26 : vector<16x128xf32>
    %28 = arith.truncf %27 : vector<16x128xf32> to vector<16x128xbf16>
    %c1 = arith.constant 1 : index
    %c0_18 = arith.constant 0 : index
    %c0_19 = arith.constant 0 : index
    %29 = vector.load %arg4[%c1, %c0_18, %c0_19] : memref<2x128x128xbf16, #tpu.memory_space<vmem>>, vector<1x128x128xbf16>
    %30 = vector.shape_cast %29 : vector<1x128x128xbf16> to vector<128x128xbf16>
    %cst_20 = arith.constant dense<0.000000e+00> : vector<16x128xf32>
    %31 = tpu.matmul %28, %30, %cst_20 {dimension_numbers = #tpu.dot_dimension_numbers<[1], [0], [0], [1], [0, 0, 1, 1], [], []>} : vector<16x128xbf16>, vector<128x128xbf16>, vector<16x128xf32> -> vector<16x128xf32>
    %c1_21 = arith.constant 1 : index
    %c0_22 = arith.constant 0 : index
    %c0_23 = arith.constant 0 : index
    %32 = vector.load %arg5[%c1_21, %c0_22, %c0_23] : memref<2x1x128xf32, #tpu.memory_space<vmem>>, vector<1x1x128xf32>
    %33 = vector.shape_cast %32 : vector<1x1x128xf32> to vector<1x128xf32>
    %34 = vector.broadcast %33 : vector<1x128xf32> to vector<16x128xf32>
    %35 = arith.addf %31, %34 : vector<16x128xf32>
    %cst_24 = arith.constant 5.000000e-01 : f32
    %36 = vector.broadcast %cst_24 : f32 to vector<16x128xf32>
    %37 = arith.mulf %36, %35 : vector<16x128xf32>
    %38 = math.tanh %37 : vector<16x128xf32>
    %cst_25 = arith.constant 5.000000e-01 : f32
    %39 = vector.broadcast %cst_25 : f32 to vector<16x128xf32>
    %40 = arith.mulf %39, %38 : vector<16x128xf32>
    %cst_26 = arith.constant 5.000000e-01 : f32
    %41 = vector.broadcast %cst_26 : f32 to vector<16x128xf32>
    %42 = arith.addf %40, %41 : vector<16x128xf32>
    %43 = arith.truncf %42 : vector<16x128xf32> to vector<16x128xbf16>
    %c0_27 = arith.constant 0 : index
    %c0_28 = arith.constant 0 : index
    %44 = vector.load %arg6[%c0_27, %c0_28] : memref<128x128xbf16, #tpu.memory_space<vmem>>, vector<128x128xbf16>
    %cst_29 = arith.constant dense<0.000000e+00> : vector<16x128xf32>
    %45 = tpu.matmul %43, %44, %cst_29 {dimension_numbers = #tpu.dot_dimension_numbers<[1], [0], [0], [1], [0, 0, 1, 1], [], []>} : vector<16x128xbf16>, vector<128x128xbf16>, vector<16x128xf32> -> vector<16x128xf32>
    %c0_30 = arith.constant 0 : index
    %c0_31 = arith.constant 0 : index
    %46 = vector.load %arg7[%c0_30, %c0_31] : memref<1x128xf32, #tpu.memory_space<vmem>>, vector<1x128xf32>
    %47 = vector.broadcast %46 : vector<1x128xf32> to vector<16x128xf32>
    %48 = arith.addf %45, %47 : vector<16x128xf32>
    %c0_32 = arith.constant 0 : index
    %c0_33 = arith.constant 0 : index
    %49 = vector.load %arg8[%c0_32, %c0_33] : memref<16x128xf32, #tpu.memory_space<vmem>>, vector<16x128xf32>
    tpu.vector_store %arg8[%c0_32, %c0_33], %48 {strides = array<i32>} : memref<16x128xf32, #tpu.memory_space<vmem>>, vector<16x128xf32>,
    return
  }
  func.func @transform_0(%arg0: i32) -> (i32, i32) {
    %c0_i32 = arith.constant 0 : i32
    %c0_i32_0 = arith.constant 0 : i32
    return %arg0, %c0_i32 : i32, i32
  }
  func.func @transform_1(%arg0: i32) -> (i32, i32) {
    %c0_i32 = arith.constant 0 : i32
    %c0_i32_0 = arith.constant 0 : i32
    %c0_i32_1 = arith.constant 0 : i32
    return %c0_i32, %c0_i32_0 : i32, i32
  }
  func.func @transform_2(%arg0: i32) -> (i32, i32) {
    %c0_i32 = arith.constant 0 : i32
    %c0_i32_0 = arith.constant 0 : i32
    %c0_i32_1 = arith.constant 0 : i32
    return %c0_i32, %c0_i32_0 : i32, i32
  }
  func.func @transform_3(%arg0: i32) -> (i32, i32, i32) {
    %c0_i32 = arith.constant 0 : i32
    %c0_i32_0 = arith.constant 0 : i32
    %c0_i32_1 = arith.constant 0 : i32
    %c0_i32_2 = arith.constant 0 : i32
    return %c0_i32, %c0_i32_0, %c0_i32_1 : i32, i32, i32
  }
  func.func @transform_4(%arg0: i32) -> (i32, i32, i32) {
    %c0_i32 = arith.constant 0 : i32
    %c0_i32_0 = arith.constant 0 : i32
    %c0_i32_1 = arith.constant 0 : i32
    %c0_i32_2 = arith.constant 0 : i32
    return %c0_i32, %c0_i32_0, %c0_i32_1 : i32, i32, i32
  }
  func.func @transform_5(%arg0: i32) -> (i32, i32) {
    %c0_i32 = arith.constant 0 : i32
    %c0_i32_0 = arith.constant 0 : i32
    %c0_i32_1 = arith.constant 0 : i32
    return %c0_i32, %c0_i32_0 : i32, i32
  }
  func.func @transform_6(%arg0: i32) -> (i32, i32) {
    %c0_i32 = arith.constant 0 : i32
    %c0_i32_0 = arith.constant 0 : i32
    %c0_i32_1 = arith.constant 0 : i32
    return %c0_i32, %c0_i32_0 : i32, i32
  }
  func.func @transform_7(%arg0: i32) -> (i32, i32) {
    %c0_i32 = arith.constant 0 : i32
    %c0_i32_0 = arith.constant 0 : i32
    return %arg0, %c0_i32 : i32, i32
  }
}

</mosaic_0001>

<bundles_post_ra>
// kernel: tpu_custom_call.1
= control target key start
LH: loop header
LB: loop body
LE: loop exit
PB: predicated region body
PF: predicated region fallthrough
CT: control target
= control target key end

     0   :  { %12 = vsyncpa [#allocation3], 0  ;;  %s873_s0 = inlined_call_operand.hbm [shape: bf16[16,128], index: 0, kind: input, shape index: {}]   ;;  %s874_s1 = inlined_call_operand.hbm [shape: bf16[128,128], index: 1, kind: input, shape index: {}]   ;;  %s875_s2 = inlined_call_operand.vmem [shape: f32[1,128], index: 2, kind: input, shape index: {}]   ;;  %s876_s3 = inlined_call_operand.hbm [shape: bf16[2,128,128], index: 3, kind: input, shape index: {}]   ;;  %s877_s4 = inlined_call_operand.vmem [shape: f32[2,1,128], index: 4, kind: input, shape index: {}]   ;;  %s878_s5 = inlined_call_operand.hbm [shape: bf16[128,128], index: 5, kind: input, shape index: {}]   ;;  %s879_s6 = inlined_call_operand.vmem [shape: f32[1,128], index: 6, kind: input, shape index: {}]   ;;  %s880_s7 = inlined_call_operand.hbm [shape: f32[16,128], index: 7, kind: output, shape index: {}]  }
   0x1   :  { %13 = vsyncpa [#allocation6], 0 }
   0x2   :  { %14 = vsyncpa [#allocation9], 0 }
   0x3   :  { %15 = vsyncpa [#allocation4], 0  ;;  %s33_s26 = sshll.u32 %s874_s1, 4  ;;  %s797_s27 = smov [#allocation5]   ;;  %s34_s26 = int_to_ptr.hbm [resolvable:$true] %s33_s26 }
   0x4   :  { %s35_s28 = sshll.u32 %s797_s27, 4  ;;  %s20_s8 = sshll.u32 %s873_s0, 4  ;;  %s36_s28 = int_to_ptr.vmem [resolvable:$true] %s35_s28  ;;  %s21_s8 = int_to_ptr.hbm [resolvable:$true] %s20_s8 }
   0x5   :  { %s798_s9 = smov 64   ;;  %s799_s10 = smov 4  }
   0x6   :  { %41 = dma.hbm_to_vmem [thread:$0]  %s34_s26, 1024, %s36_s28, [#allocation6], %s798_s9, %s798_s9, %s799_s10  }
   0x7   :  { %s800_s11 = smov [#allocation2]   ;;  %s48_s15 = sshll.u32 %s876_s3, 4  ;;  %s49_s15 = int_to_ptr.hbm [resolvable:$true] %s48_s15 }
   0x8   :  { %s22_s12 = sshll.u32 %s800_s11, 4  ;;  %s63_s17 = sshll.u32 %s878_s5, 4  ;;  %s23_s12 = int_to_ptr.vmem [resolvable:$true] %s22_s12  ;;  %s64_s17 = int_to_ptr.hbm [resolvable:$true] %s63_s17 }
   0x9   :  { %28 = dma.hbm_to_vmem [thread:$0]  %s21_s8, 128, %s23_s12, [#allocation3], %s798_s9, %s798_s9, %s799_s10  }
   0xa   :  { %s801_s18 = smov [#allocation7]   ;;  %s802_s0 = smov [#allocation8]  }
   0xb   :  { %s50_s19 = sshll.u32 %s801_s18, 4  ;;  %s65_s20 = sshll.u32 %s802_s0, 4  ;;  %s51_s19 = int_to_ptr.vmem [resolvable:$true] %s50_s19  ;;  %s66_s20 = int_to_ptr.vmem [resolvable:$true] %s65_s20 }
   0xc   :  { %56 = dma.hbm_to_vmem [thread:$0]  %s49_s15, 2048, %s51_s19, [#allocation6], %s798_s9, %s798_s9, %s799_s10  }
   0xd   :  { %71 = dma.hbm_to_vmem [thread:$0]  %s64_s17, 1024, %s66_s20, [#allocation9], %s798_s9, %s798_s9, %s799_s10  }
   0xe   :  { %789 = dma.done.wait [#allocation3], 128  }
   0xf   :  { %790 = vsyncadd [#allocation3], 4294967168 }
  0x10   :  { %791 = dma.done.wait [#allocation6], 3072  }
  0x11   :  { %792 = vsyncadd [#allocation6], 4294964224 }
  0x12   :  { %793 = dma.done.wait [#allocation9], 1024  }
  0x13   :  { %794 = vsyncadd [#allocation9], 4294966272  ;;  %v619_v0 = vld [vmem:[#allocation5 + $0x38] sm:$0xff]  ;;  %v618_v1 = vld [vmem:[#allocation5 + $0x30] sm:$0xff]  ;;  %s463_s29 = sshll.u32 %s880_s7, 4  ;;  %s804_s30 = smov 128   ;;  %s464_s29 = int_to_ptr.hbm [resolvable:$true] %s463_s29 }
  0x14   :  { %166 = vmatpush.bf16.msra.mxu0 %v619_v0  ;;  %v627_v2 = vld [vmem:[#allocation7 + $0x38] sm:$0xff]  ;;  %v626_v3 = vld [vmem:[#allocation7 + $0x30] sm:$0xff]  ;;  %v617_v4 = vld [vmem:[#allocation5 + $0x28] sm:$0xff]  ;;  %s805_s8 = smov 8  }
  0x15   :  { %257 = vmatpush.bf16.msra.mxu1 %v627_v2  ;;  %v616_v5 = vld [vmem:[#allocation5 + $0x20] sm:$0xff]  ;;  %v615_v6 = vld [vmem:[#allocation5 + $0x18] sm:$0xff]  ;;  %v614_v7 = vld [vmem:[#allocation5 + $0x10] sm:$0xff] }
  0x16   :  { %v613_v8 = vld [vmem:[#allocation5 + $0x8] sm:$0xff]  ;;  %v612_v9 = vld [vmem:[#allocation5] sm:$0xff]  ;;  %v611_v10 = vld [vmem:[#allocation2] sm:$0xff] }
  0x17   :  { %v625_v11 = vld [vmem:[#allocation7 + $0x28] sm:$0xff]  ;;  %v624_v12 = vld [vmem:[#allocation7 + $0x20] sm:$0xff]  ;;  %v623_v13 = vld [vmem:[#allocation7 + $0x18] sm:$0xff] }
  0x18   :  { %167 = vmatpush.bf16.msra.mxu0 %v618_v1  ;;  %v622_v14 = vld [vmem:[#allocation7 + $0x10] sm:$0xff]  ;;  %v621_v15 = vld [vmem:[#allocation7 + $0x8] sm:$0xff]  ;;  %v620_v16 = vld [vmem:[#allocation7] sm:$0xff] }
  0x19   :  { %258 = vmatpush.bf16.msra.mxu1 %v626_v3  ;;  %v635_v17 = vld [vmem:[#allocation7 + $0x78] sm:$0xff]  ;;  %v634_v18 = vld [vmem:[#allocation7 + $0x70] sm:$0xff]  ;;  %v633_v33 = vld [vmem:[#allocation7 + $0x68] sm:$0xff] }
  0x1a   :  { %350 = vmatpush.bf16.msra.mxu2 %v635_v17  ;;  %v653_v19 = vld [vmem:[%s875_s2] ss:$0 sm:$0xff]  ;;  %v632_v34 = vld [vmem:[#allocation7 + $0x60] sm:$0xff]  ;;  %v630_v36 = vld [vmem:[#allocation7 + $0x50] sm:$0xff] }
  0x1b   :  { %v631_v35 = vld [vmem:[#allocation7 + $0x58] sm:$0xff]  ;;  %v629_v37 = vld [vmem:[#allocation7 + $0x48] sm:$0xff]  ;;  %v628_v38 = vld [vmem:[#allocation7 + $0x40] sm:$0xff] }
  0x1c   :  { %168 = vmatpush.bf16.msra.mxu0 %v617_v4  ;;  %v643_v39 = vld [vmem:[#allocation8 + $0x38] sm:$0xff]  ;;  %v642_v40 = vld [vmem:[#allocation8 + $0x30] sm:$0xff]  ;;  %v641_v55 = vld [vmem:[#allocation8 + $0x28] sm:$0xff] }
  0x1d   :  { %259 = vmatpush.bf16.msra.mxu1 %v625_v11  ;;  %441 = vmatpush.bf16.msra.mxu3 %v643_v39  ;;  %v654_v41 = vld [vmem:[%s877_s4] ss:$0 sm:$0xff]  ;;  %v640_v56 = vld [vmem:[#allocation8 + $0x20] sm:$0xff]  ;;  %v638_v58 = vld [vmem:[#allocation8 + $0x10] sm:$0xff] }
  0x1e   :  { %351 = vmatpush.bf16.msra.mxu2 %v634_v18  ;;  %v639_v57 = vld [vmem:[#allocation8 + $0x18] sm:$0xff]  ;;  %v637_v59 = vld [vmem:[#allocation8 + $0x8] sm:$0xff]  ;;  %v636_v60 = vld [vmem:[#allocation8] sm:$0xff] }
  0x1f   :  { %v655_v61 = vld [vmem:[%s877_s4 + $0x1] ss:$0 sm:$0xff]  ;;  %v656_v11 = vld [vmem:[%s879_s6] ss:$0 sm:$0xff]  ;;  %s803_s4 = smov [#allocation10]  }
  0x20   :  { %169 = vmatpush.bf16.msra.mxu0 %v616_v5  ;;  %s461_s26 = sshll.u32 %s803_s4, 4  ;;  %s462_s26 = int_to_ptr.vmem [resolvable:$true] %s461_s26 }
  0x21   :  { %260 = vmatpush.bf16.msra.mxu1 %v624_v12  ;;  %442 = vmatpush.bf16.msra.mxu3 %v642_v40 }
  0x22   :  { %352 = vmatpush.bf16.msra.mxu2 %v633_v33 }
  0x24   :  { %170 = vmatpush.bf16.msra.mxu0 %v615_v6 }
  0x25   :  { %261 = vmatpush.bf16.msra.mxu1 %v623_v13  ;;  %443 = vmatpush.bf16.msra.mxu3 %v641_v55 }
  0x26   :  { %353 = vmatpush.bf16.msra.mxu2 %v632_v34 }
  0x28   :  { %171 = vmatpush.bf16.msra.mxu0 %v614_v7 }
  0x29   :  { %262 = vmatpush.bf16.msra.mxu1 %v622_v14  ;;  %444 = vmatpush.bf16.msra.mxu3 %v640_v56 }
  0x2a   :  { %354 = vmatpush.bf16.msra.mxu2 %v631_v35 }
  0x2c   :  { %172 = vmatpush.bf16.msra.mxu0 %v613_v8 }
  0x2d   :  { %263 = vmatpush.bf16.msra.mxu1 %v621_v15  ;;  %445 = vmatpush.bf16.msra.mxu3 %v639_v57 }
  0x2e   :  { %355 = vmatpush.bf16.msra.mxu2 %v630_v36 }
  0x30   :  { %173 = vmatpush.bf16.msra.mxu0 %v612_v9 }
  0x31   :  { %264 = vmatpush.bf16.msra.mxu1 %v620_v16  ;;  %446 = vmatpush.bf16.msra.mxu3 %v638_v58 }
  0x32   :  { %356 = vmatpush.bf16.msra.mxu2 %v629_v37 }
  0x33   :  { %174 = vmatmul.bf16.vlgmr.msra.gmra.mxu0 %v611_v10 }
  0x35   :  { %447 = vmatpush.bf16.msra.mxu3 %v637_v59 }
  0x36   :  { %357 = vmatpush.bf16.msra.mxu2 %v628_v38 }
  0x39   :  { %448 = vmatpush.bf16.msra.mxu3 %v636_v60 }
  0xb0   :  { %v175_v20 = vpop.f32.mrf.mxu0 }
  0xb1   :  { %v176_v21 = vadd.f32 %v653_v19, %v175_v20 }
  0xb3   :  { %v180_v22 = vmul.f32 0.5, %v176_v21 }
  0xb5   :  { %657 = vtanh.f32 %v180_v22 }
  0xb8   :  { %v177_v23 = vpop.f32.mrf.mxu0 }
  0xb9   :  { %v178_v24 = vadd.f32 %v653_v19, %v177_v23 }
  0xbb   :  { %v181_v25 = vmul.f32 0.5, %v178_v24  ;;  %v658_v26 = vpop.eup %657 }
  0xbc   :  { %v184_v27 = vmul.f32 0.5, %v658_v26 }
  0xbd   :  { %659 = vtanh.f32 %v181_v25 }
  0xbe   :  { %v186_v30 = vadd.f32 0.5, %v184_v27 }
  0xc3   :  { %v660_v28 = vpop.eup %659 }
  0xc4   :  { %v185_v29 = vmul.f32 0.5, %v660_v28 }
  0xc6   :  { %v187_v31 = vadd.f32 0.5, %v185_v29 }
  0xc8   :  { %v188_v32 = vpack.c.bf16 %v187_v31, %v186_v30 }
  0xca   :  { %265 = vmatmul.bf16.vlgmr.msra.gmra.mxu1 %v188_v32 }
 0x147   :  { %v266_v42 = vpop.f32.mrf.mxu1 }
 0x148   :  { %v267_v43 = vadd.f32 %v654_v41, %v266_v42 }
 0x14a   :  { %v271_v44 = vmul.f32 0.5, %v267_v43 }
 0x14c   :  { %661 = vtanh.f32 %v271_v44 }
 0x14f   :  { %v268_v45 = vpop.f32.mrf.mxu1 }
 0x150   :  { %v269_v46 = vadd.f32 %v654_v41, %v268_v45 }
 0x152   :  { %v272_v47 = vmul.f32 0.5, %v269_v46  ;;  %v662_v48 = vpop.eup %661 }
 0x153   :  { %v275_v49 = vmul.f32 0.5, %v662_v48 }
 0x154   :  { %663 = vtanh.f32 %v272_v47 }
 0x155   :  { %v277_v52 = vadd.f32 0.5, %v275_v49 }
 0x15a   :  { %v664_v50 = vpop.eup %663 }
 0x15b   :  { %v276_v51 = vmul.f32 0.5, %v664_v50 }
 0x15d   :  { %v278_v53 = vadd.f32 0.5, %v276_v51 }
 0x15f   :  { %v279_v54 = vpack.c.bf16 %v278_v53, %v277_v52 }
 0x161   :  { %358 = vmatmul.bf16.vlgmr.msra.gmra.mxu2 %v279_v54 }
 0x1e4   :  { %v359_v62 = vpop.f32.mrf.mxu2 }
 0x1e5   :  { %v360_v63 = vadd.f32 %v655_v61, %v359_v62 }
 0x1e7   :  { %v364_v0 = vmul.f32 0.5, %v360_v63 }
 0x1e9   :  { %665 = vtanh.f32 %v364_v0 }
 0x1ec   :  { %v361_v1 = vpop.f32.mrf.mxu2 }
 0x1ed   :  { %v362_v2 = vadd.f32 %v655_v61, %v361_v1 }
 0x1ef   :  { %v365_v3 = vmul.f32 0.5, %v362_v2  ;;  %v666_v4 = vpop.eup %665 }
 0x1f0   :  { %v368_v5 = vmul.f32 0.5, %v666_v4 }
 0x1f1   :  { %667 = vtanh.f32 %v365_v3 }
 0x1f2   :  { %v370_v8 = vadd.f32 0.5, %v368_v5 }
 0x1f7   :  { %v668_v6 = vpop.eup %667 }
 0x1f8   :  { %v369_v7 = vmul.f32 0.5, %v668_v6 }
 0x1fa   :  { %v371_v9 = vadd.f32 0.5, %v369_v7 }
 0x1fc   :  { %v372_v10 = vpack.c.bf16 %v371_v9, %v370_v8 }
 0x1fe   :  { %449 = vmatmul.bf16.vlgmr.msra.gmra.mxu3 %v372_v10 }
 0x281   :  { %v450_v12 = vpop.f32.mrf.mxu3 }
 0x282   :  { %v451_v13 = vadd.f32 %v656_v11, %v450_v12 }
 0x284   :  { %455 = vst [vmem:[#allocation10] sm:$0xff] %v451_v13 }
 0x289   :  { %v452_v14 = vpop.f32.mrf.mxu3 }
 0x28a   :  { %v453_v15 = vadd.f32 %v656_v11, %v452_v14 }
 0x28c   :  { %456 = vst [vmem:[#allocation10 + $0x8] sm:$0xff] %v453_v15 }
 0x28d   :  { %469 = dma.vmem_to_hbm [thread:$0]  %s462_s26, 256, %s464_s29, [#allocation4], %s804_s30, %s804_s30, %s805_s8  }
 0x28e   :  { %795 = dma.done.wait [#allocation4], 256  }
 0x28f   :  { %796 = vsyncadd [#allocation4], 4294967040 }
 0x290   :  { %474 = vsyncpa [#allocation3], 1 }
 0x291   :  { %475 = vsyncpa [#allocation6], 1 }
 0x292   :  { %476 = vsyncpa [#allocation9], 1 }
 0x293   :  { %477 = vsyncpa [#allocation4], 1 }

// kernel: tpu_custom_call.1
= control target key start
LH: loop header
LB: loop body
LE: loop exit
PB: predicated region body
PF: predicated region fallthrough
CT: control target
= control target key end

     0   :  { %12 = vsyncpa [#allocation3], 0  ;;  %s873_s0 = inlined_call_operand.hbm [shape: bf16[16,128], index: 0, kind: input, shape index: {}]   ;;  %s874_s1 = inlined_call_operand.hbm [shape: bf16[128,128], index: 1, kind: input, shape index: {}]   ;;  %s875_s2 = inlined_call_operand.vmem [shape: f32[1,128], index: 2, kind: input, shape index: {}]   ;;  %s876_s3 = inlined_call_operand.hbm [shape: bf16[2,128,128], index: 3, kind: input, shape index: {}]   ;;  %s877_s4 = inlined_call_operand.vmem [shape: f32[2,1,128], index: 4, kind: input, shape index: {}]   ;;  %s878_s5 = inlined_call_operand.hbm [shape: bf16[128,128], index: 5, kind: input, shape index: {}]   ;;  %s879_s6 = inlined_call_operand.vmem [shape: f32[1,128], index: 6, kind: input, shape index: {}]   ;;  %s880_s7 = inlined_call_operand.hbm [shape: f32[16,128], index: 7, kind: output, shape index: {}]  }
   0x1   :  { %13 = vsyncpa [#allocation6], 0 }
   0x2   :  { %14 = vsyncpa [#allocation9], 0 }
   0x3   :  { %15 = vsyncpa [#allocation4], 0  ;;  %s33_s26 = sshll.u32 %s874_s1, 4  ;;  %s797_s27 = smov [#allocation5]   ;;  %s34_s26 = int_to_ptr.hbm [resolvable:$true] %s33_s26 }
   0x4   :  { %s35_s28 = sshll.u32 %s797_s27, 4  ;;  %s20_s8 = sshll.u32 %s873_s0, 4  ;;  %s36_s28 = int_to_ptr.vmem [resolvable:$true] %s35_s28  ;;  %s21_s8 = int_to_ptr.hbm [resolvable:$true] %s20_s8 }
   0x5   :  { %s798_s9 = smov 64   ;;  %s799_s10 = smov 4  }
   0x6   :  { %41 = dma.hbm_to_vmem [thread:$0]  %s34_s26, 1024, %s36_s28, [#allocation6], %s798_s9, %s798_s9, %s799_s10  }
   0x7   :  { %s800_s11 = smov [#allocation2]   ;;  %s48_s15 = sshll.u32 %s876_s3, 4  ;;  %s49_s15 = int_to_ptr.hbm [resolvable:$true] %s48_s15 }
   0x8   :  { %s22_s12 = sshll.u32 %s800_s11, 4  ;;  %s63_s17 = sshll.u32 %s878_s5, 4  ;;  %s23_s12 = int_to_ptr.vmem [resolvable:$true] %s22_s12  ;;  %s64_s17 = int_to_ptr.hbm [resolvable:$true] %s63_s17 }
   0x9   :  { %28 = dma.hbm_to_vmem [thread:$0]  %s21_s8, 128, %s23_s12, [#allocation3], %s798_s9, %s798_s9, %s799_s10  }
   0xa   :  { %s801_s18 = smov [#allocation7]   ;;  %s802_s0 = smov [#allocation8]  }
   0xb   :  { %s50_s19 = sshll.u32 %s801_s18, 4  ;;  %s65_s20 = sshll.u32 %s802_s0, 4  ;;  %s51_s19 = int_to_ptr.vmem [resolvable:$true] %s50_s19  ;;  %s66_s20 = int_to_ptr.vmem [resolvable:$true] %s65_s20 }
   0xc   :  { %56 = dma.hbm_to_vmem [thread:$0]  %s49_s15, 2048, %s51_s19, [#allocation6], %s798_s9, %s798_s9, %s799_s10  }
   0xd   :  { %71 = dma.hbm_to_vmem [thread:$0]  %s64_s17, 1024, %s66_s20, [#allocation9], %s798_s9, %s798_s9, %s799_s10  }
   0xe   :  { %789 = dma.done.wait [#allocation3], 128  }
   0xf   :  { %790 = vsyncadd [#allocation3], 4294967168 }
  0x10   :  { %791 = dma.done.wait [#allocation6], 3072  }
  0x11   :  { %792 = vsyncadd [#allocation6], 4294964224 }
  0x12   :  { %793 = dma.done.wait [#allocation9], 1024  }
  0x13   :  { %794 = vsyncadd [#allocation9], 4294966272  ;;  %v619_v0 = vld [vmem:[#allocation5 + $0x38] sm:$0xff]  ;;  %v618_v1 = vld [vmem:[#allocation5 + $0x30] sm:$0xff]  ;;  %s463_s29 = sshll.u32 %s880_s7, 4  ;;  %s804_s30 = smov 128   ;;  %s464_s29 = int_to_ptr.hbm [resolvable:$true] %s463_s29 }
  0x14   :  { %166 = vmatpush.bf16.msra.mxu0 %v619_v0  ;;  %v627_v2 = vld [vmem:[#allocation7 + $0x38] sm:$0xff]  ;;  %v626_v3 = vld [vmem:[#allocation7 + $0x30] sm:$0xff]  ;;  %v617_v4 = vld [vmem:[#allocation5 + $0x28] sm:$0xff]  ;;  %s805_s8 = smov 8  }
  0x15   :  { %257 = vmatpush.bf16.msra.mxu1 %v627_v2  ;;  %v616_v5 = vld [vmem:[#allocation5 + $0x20] sm:$0xff]  ;;  %v615_v6 = vld [vmem:[#allocation5 + $0x18] sm:$0xff]  ;;  %v614_v7 = vld [vmem:[#allocation5 + $0x10] sm:$0xff] }
  0x16   :  { %v613_v8 = vld [vmem:[#allocation5 + $0x8] sm:$0xff]  ;;  %v612_v9 = vld [vmem:[#allocation5] sm:$0xff]  ;;  %v611_v10 = vld [vmem:[#allocation2] sm:$0xff] }
  0x17   :  { %v625_v11 = vld [vmem:[#allocation7 + $0x28] sm:$0xff]  ;;  %v624_v12 = vld [vmem:[#allocation7 + $0x20] sm:$0xff]  ;;  %v623_v13 = vld [vmem:[#allocation7 + $0x18] sm:$0xff] }
  0x18   :  { %167 = vmatpush.bf16.msra.mxu0 %v618_v1  ;;  %v622_v14 = vld [vmem:[#allocation7 + $0x10] sm:$0xff]  ;;  %v621_v15 = vld [vmem:[#allocation7 + $0x8] sm:$0xff]  ;;  %v620_v16 = vld [vmem:[#allocation7] sm:$0xff] }
  0x19   :  { %258 = vmatpush.bf16.msra.mxu1 %v626_v3  ;;  %v635_v17 = vld [vmem:[#allocation7 + $0x78] sm:$0xff]  ;;  %v634_v18 = vld [vmem:[#allocation7 + $0x70] sm:$0xff]  ;;  %v633_v33 = vld [vmem:[#allocation7 + $0x68] sm:$0xff] }
  0x1a   :  { %350 = vmatpush.bf16.msra.mxu2 %v635_v17  ;;  %v653_v19 = vld [vmem:[%s875_s2] ss:$0 sm:$0xff]  ;;  %v632_v34 = vld [vmem:[#allocation7 + $0x60] sm:$0xff]  ;;  %v630_v36 = vld [vmem:[#allocation7 + $0x50] sm:$0xff] }
  0x1b   :  { %v631_v35 = vld [vmem:[#allocation7 + $0x58] sm:$0xff]  ;;  %v629_v37 = vld [vmem:[#allocation7 + $0x48] sm:$0xff]  ;;  %v628_v38 = vld [vmem:[#allocation7 + $0x40] sm:$0xff] }
  0x1c   :  { %168 = vmatpush.bf16.msra.mxu0 %v617_v4  ;;  %v643_v39 = vld [vmem:[#allocation8 + $0x38] sm:$0xff]  ;;  %v642_v40 = vld [vmem:[#allocation8 + $0x30] sm:$0xff]  ;;  %v641_v55 = vld [vmem:[#allocation8 + $0x28] sm:$0xff] }
  0x1d   :  { %259 = vmatpush.bf16.msra.mxu1 %v625_v11  ;;  %441 = vmatpush.bf16.msra.mxu3 %v643_v39  ;;  %v654_v41 = vld [vmem:[%s877_s4] ss:$0 sm:$0xff]  ;;  %v640_v56 = vld [vmem:[#allocation8 + $0x20] sm:$0xff]  ;;  %v638_v58 = vld [vmem:[#allocation8 + $0x10] sm:$0xff] }
  0x1e   :  { %351 = vmatpush.bf16.msra.mxu2 %v634_v18  ;;  %v639_v57 = vld [vmem:[#allocation8 + $0x18] sm:$0xff]  ;;  %v637_v59 = vld [vmem:[#allocation8 + $0x8] sm:$0xff]  ;;  %v636_v60 = vld [vmem:[#allocation8] sm:$0xff] }
  0x1f   :  { %v655_v61 = vld [vmem:[%s877_s4 + $0x1] ss:$0 sm:$0xff]  ;;  %v656_v11 = vld [vmem:[%s879_s6] ss:$0 sm:$0xff]  ;;  %s803_s4 = smov [#allocation10]  }
  0x20   :  { %169 = vmatpush.bf16.msra.mxu0 %v616_v5  ;;  %s461_s26 = sshll.u32 %s803_s4, 4  ;;  %s462_s26 = int_to_ptr.vmem [resolvable:$true] %s461_s26 }
  0x21   :  { %260 = vmatpush.bf16.msra.mxu1 %v624_v12  ;;  %442 = vmatpush.bf16.msra.mxu3 %v642_v40 }
  0x22   :  { %352 = vmatpush.bf16.msra.mxu2 %v633_v33 }
  0x24   :  { %170 = vmatpush.bf16.msra.mxu0 %v615_v6 }
  0x25   :  { %261 = vmatpush.bf16.msra.mxu1 %v623_v13  ;;  %443 = vmatpush.bf16.msra.mxu3 %v641_v55 }
  0x26   :  { %353 = vmatpush.bf16.msra.mxu2 %v632_v34 }
  0x28   :  { %171 = vmatpush.bf16.msra.mxu0 %v614_v7 }
  0x29   :  { %262 = vmatpush.bf16.msra.mxu1 %v622_v14  ;;  %444 = vmatpush.bf16.msra.mxu3 %v640_v56 }
  0x2a   :  { %354 = vmatpush.bf16.msra.mxu2 %v631_v35 }
  0x2c   :  { %172 = vmatpush.bf16.msra.mxu0 %v613_v8 }
  0x2d   :  { %263 = vmatpush.bf16.msra.mxu1 %v621_v15  ;;  %445 = vmatpush.bf16.msra.mxu3 %v639_v57 }
  0x2e   :  { %355 = vmatpush.bf16.msra.mxu2 %v630_v36 }
  0x30   :  { %173 = vmatpush.bf16.msra.mxu0 %v612_v9 }
  0x31   :  { %264 = vmatpush.bf16.msra.mxu1 %v620_v16  ;;  %446 = vmatpush.bf16.msra.mxu3 %v638_v58 }
  0x32   :  { %356 = vmatpush.bf16.msra.mxu2 %v629_v37 }
  0x33   :  { %174 = vmatmul.bf16.vlgmr.msra.gmra.mxu0 %v611_v10 }
  0x35   :  { %447 = vmatpush.bf16.msra.mxu3 %v637_v59 }
  0x36   :  { %357 = vmatpush.bf16.msra.mxu2 %v628_v38 }
  0x39   :  { %448 = vmatpush.bf16.msra.mxu3 %v636_v60 }
  0xb0   :  { %v175_v20 = vpop.f32.mrf.mxu0 }
  0xb1   :  { %v176_v21 = vadd.f32 %v653_v19, %v175_v20 }
  0xb3   :  { %v180_v22 = vmul.f32 0.5, %v176_v21 }
  0xb5   :  { %657 = vtanh.f32 %v180_v22 }
  0xb8   :  { %v177_v23 = vpop.f32.mrf.mxu0 }
  0xb9   :  { %v178_v24 = vadd.f32 %v653_v19, %v177_v23 }
  0xbb   :  { %v181_v25 = vmul.f32 0.5, %v178_v24  ;;  %v658_v26 = vpop.eup %657 }
  0xbc   :  { %v184_v27 = vmul.f32 0.5, %v658_v26 }
  0xbd   :  { %659 = vtanh.f32 %v181_v25 }
  0xbe   :  { %v186_v30 = vadd.f32 0.5, %v184_v27 }
  0xc3   :  { %v660_v28 = vpop.eup %659 }
  0xc4   :  { %v185_v29 = vmul.f32 0.5, %v660_v28 }
  0xc6   :  { %v187_v31 = vadd.f32 0.5, %v185_v29 }
  0xc8   :  { %v188_v32 = vpack.c.bf16 %v187_v31, %v186_v30 }
  0xca   :  { %265 = vmatmul.bf16.vlgmr.msra.gmra.mxu1 %v188_v32 }
 0x147   :  { %v266_v42 = vpop.f32.mrf.mxu1 }
 0x148   :  { %v267_v43 = vadd.f32 %v654_v41, %v266_v42 }
 0x14a   :  { %v271_v44 = vmul.f32 0.5, %v267_v43 }
 0x14c   :  { %661 = vtanh.f32 %v271_v44 }
 0x14f   :  { %v268_v45 = vpop.f32.mrf.mxu1 }
 0x150   :  { %v269_v46 = vadd.f32 %v654_v41, %v268_v45 }
 0x152   :  { %v272_v47 = vmul.f32 0.5, %v269_v46  ;;  %v662_v48 = vpop.eup %661 }
 0x153   :  { %v275_v49 = vmul.f32 0.5, %v662_v48 }
 0x154   :  { %663 = vtanh.f32 %v272_v47 }
 0x155   :  { %v277_v52 = vadd.f32 0.5, %v275_v49 }
 0x15a   :  { %v664_v50 = vpop.eup %663 }
 0x15b   :  { %v276_v51 = vmul.f32 0.5, %v664_v50 }
 0x15d   :  { %v278_v53 = vadd.f32 0.5, %v276_v51 }
 0x15f   :  { %v279_v54 = vpack.c.bf16 %v278_v53, %v277_v52 }
 0x161   :  { %358 = vmatmul.bf16.vlgmr.msra.gmra.mxu2 %v279_v54 }
 0x1e4   :  { %v359_v62 = vpop.f32.mrf.mxu2 }
 0x1e5   :  { %v360_v63 = vadd.f32 %v655_v61, %v359_v62 }
 0x1e7   :  { %v364_v0 = vmul.f32 0.5, %v360_v63 }
 0x1e9   :  { %665 = vtanh.f32 %v364_v0 }
 0x1ec   :  { %v361_v1 = vpop.f32.mrf.mxu2 }
 0x1ed   :  { %v362_v2 = vadd.f32 %v655_v61, %v361_v1 }
 0x1ef   :  { %v365_v3 = vmul.f32 0.5, %v362_v2  ;;  %v666_v4 = vpop.eup %665 }
 0x1f0   :  { %v368_v5 = vmul.f32 0.5, %v666_v4 }
 0x1f1   :  { %667 = vtanh.f32 %v365_v3 }
 0x1f2   :  { %v370_v8 = vadd.f32 0.5, %v368_v5 }
 0x1f7   :  { %v668_v6 = vpop.eup %667 }
 0x1f8   :  { %v369_v7 = vmul.f32 0.5, %v668_v6 }
 0x1fa   :  { %v371_v9 = vadd.f32 0.5, %v369_v7 }
 0x1fc   :  { %v372_v10 = vpack.c.bf16 %v371_v9, %v370_v8 }
 0x1fe   :  { %449 = vmatmul.bf16.vlgmr.msra.gmra.mxu3 %v372_v10 }
 0x281   :  { %v450_v12 = vpop.f32.mrf.mxu3 }
 0x282   :  { %v451_v13 = vadd.f32 %v656_v11, %v450_v12 }
 0x284   :  { %455 = vst [vmem:[#allocation10] sm:$0xff] %v451_v13 }
 0x289   :  { %v452_v14 = vpop.f32.mrf.mxu3 }
 0x28a   :  { %v453_v15 = vadd.f32 %v656_v11, %v452_v14 }
 0x28c   :  { %456 = vst [vmem:[#allocation10 + $0x8] sm:$0xff] %v453_v15 }
 0x28d   :  { %469 = dma.vmem_to_hbm [thread:$0]  %s462_s26, 256, %s464_s29, [#allocation4], %s804_s30, %s804_s30, %s805_s8  }
 0x28e   :  { %795 = dma.done.wait [#allocation4], 256  }
 0x28f   :  { %796 = vsyncadd [#allocation4], 4294967040 }
 0x290   :  { %474 = vsyncpa [#allocation3], 1 }
 0x291   :  { %475 = vsyncpa [#allocation6], 1 }
 0x292   :  { %476 = vsyncpa [#allocation9], 1 }
 0x293   :  { %477 = vsyncpa [#allocation4], 1 }

</bundles_post_ra>
